<compile_context>
chip_gen: v7x
topology: tpu7x:2x2x1
jax: 0.10.0
libtpu: 0.0.40
codegen_flags: <defaults>
</compile_context>

<pallas_src>
import functools

import jax
import jax.numpy as jnp
from jax.experimental import pallas as pl
from jax.experimental.pallas import tpu as pltpu


def _round_up(n, m):
    return ((n + m - 1) // m) * m


def mlp_kernel(x_ref, w1_ref, b1_ref, w2_ref, b2_ref, w3_ref, b3_ref, o_ref):
    # x_ref: (11, TB)  -- batch on lanes, features on sublanes.
    xT = x_ref[...]

    # Layer 1: (H, 11) @ (11, TB) -> (H, TB), bias (H, 1) broadcasts over lanes.
    h1 = jnp.dot(w1_ref[...], xT, preferred_element_type=jnp.float32)
    h1 = jnp.maximum(h1 + b1_ref[...], 0.0)          # ReLU (Dropout = identity, eval)

    # Layer 2: (H, H) @ (H, TB) -> (H, TB)
    h2 = jnp.dot(w2_ref[...], h1, preferred_element_type=jnp.float32)
    h2 = jnp.maximum(h2 + b2_ref[...], 0.0)          # ReLU (Dropout = identity, eval)

    # Layer 3: (1, H) @ (H, TB) -> (1, TB)  -- lane-dense output tile.
    out = jnp.dot(w3_ref[...], h2, preferred_element_type=jnp.float32)
    o_ref[...] = (out + b3_ref[...]).astype(o_ref.dtype)


@functools.partial(jax.jit, static_argnames=("tb",))
def nn_forward(x, params, *, tb=1024):
    """x: (B, 11) float32 -> (B, 1) float32."""
    w1, b1, w2, b2, w3, b3 = params          # W: (out, in), b: (out, 1)
    B, in_f = x.shape
    H = w1.shape[0]

    # Tile size: lane-dense (multiple of 128), capped at `tb`, and pad the
    # batch so the grid divides evenly (padded columns are sliced off).
    TB = min(tb, _round_up(B, 128))
    Bp = _round_up(B, TB)
    xT = jnp.pad(x.T, ((0, 0), (0, Bp - B)))          # (11, Bp)

    grid = (Bp // TB,)
    const2d = lambda i: (0, 0)                        # weights stay VMEM-resident

    flops = 2 * Bp * (in_f * H + H * H + H * 1)
    bytes_accessed = 4 * (xT.size + Bp + sum(int(p.size) for p in params))

    out_t = pl.pallas_call(
        mlp_kernel,
        out_shape=jax.ShapeDtypeStruct((1, Bp), jnp.float32),
        grid_spec=pltpu.PrefetchScalarGridSpec(
            num_scalar_prefetch=0,
            grid=grid,
            in_specs=[
                pl.BlockSpec((in_f, TB), lambda i: (0, i)),   # stream x tiles
                pl.BlockSpec(w1.shape, const2d),
                pl.BlockSpec(b1.shape, const2d),
                pl.BlockSpec(w2.shape, const2d),
                pl.BlockSpec(b2.shape, const2d),
                pl.BlockSpec(w3.shape, const2d),
                pl.BlockSpec(b3.shape, const2d),
            ],
            out_specs=pl.BlockSpec((1, TB), lambda i: (0, i)),  # lane-dense store
        ),
        compiler_params=pltpu.CompilerParams(
            dimension_semantics=("parallel",),
        ),
        cost_estimate=pl.CostEstimate(
            flops=flops, transcendentals=0, bytes_accessed=bytes_accessed),
    )(xT, w1, b1, w2, b2, w3, b3)

    return out_t[:, :B].T                             # (B, 1)


def init_params(key, in_features=11, hidden=32, out_features=1):
    """PyTorch-style U(-1/sqrt(fan_in), 1/sqrt(fan_in)); W stored (out, in)."""
    ks = jax.random.split(key, 6)

    def linear(kw, kb, fan_in, fan_out):
        bound = 1.0 / jnp.sqrt(jnp.float32(fan_in))
        w = jax.random.uniform(kw, (fan_out, fan_in), jnp.float32, -bound, bound)
        b = jax.random.uniform(kb, (fan_out, 1), jnp.float32, -bound, bound)
        return w, b

    w1, b1 = linear(ks[0], ks[1], in_features, hidden)
    w2, b2 = linear(ks[2], ks[3], hidden, hidden)
    w3, b3 = linear(ks[4], ks[5], hidden, out_features)
    return (w1, b1, w2, b2, w3, b3)


def _ref_forward(x, params):
    w1, b1, w2, b2, w3, b3 = params
    h = jnp.maximum(x @ w1.T + b1.T, 0.0)
    h = jnp.maximum(h @ w2.T + b2.T, 0.0)
    return h @ w3.T + b3.T


if __name__ == "__main__":
    key = jax.random.PRNGKey(0)
    k_x, k_x2, k_p = jax.random.split(key, 3)

    IN, HIDDEN = 11, 32       # nn_config = {'hidden_layer_width': 32, 'dropout': 0.0}
    params = init_params(k_p, IN, HIDDEN, 1)

    # Small demo batch (single grid step, padded up to one 128-lane tile).
    B = 8
    x = jax.random.normal(k_x, (B, IN), dtype=jnp.float32)
    y = nn_forward(x, params)
    jax.block_until_ready(y)
    assert y.shape == (B, 1)
    assert jnp.allclose(y, _ref_forward(x, params), atol=1e-5), "mismatch (B=8)"

    # Ragged batch exercising a multi-step grid (TB=128 -> 3 grid steps).
    B2 = 300
    x2 = jax.random.normal(k_x2, (B2, IN), dtype=jnp.float32)
    y2 = nn_forward(x2, params, tb=128)
    jax.block_until_ready(y2)
    assert y2.shape == (B2, 1)
    assert jnp.allclose(y2, _ref_forward(x2, params), atol=1e-5), "mismatch (B=300)"

    print("KERNEL_OK")
</pallas_src>

<mosaic_0001>
module attributes {stable_mosaic.version = 11 : i64} {
  func.func @mlp_kernel(%arg0: i32, %arg1: memref<11x128xf32, #tpu.memory_space<vmem>>, %arg2: memref<32x11xf32, #tpu.memory_space<vmem>>, %arg3: memref<32x1xf32, #tpu.memory_space<vmem>>, %arg4: memref<32x32xf32, #tpu.memory_space<vmem>>, %arg5: memref<32x1xf32, #tpu.memory_space<vmem>>, %arg6: memref<1x32xf32, #tpu.memory_space<vmem>>, %arg7: memref<1x1xf32, #tpu.memory_space<vmem>>, %arg8: memref<1x128xf32, #tpu.memory_space<vmem>>) attributes {dimension_semantics = [#tpu.dimension_semantics<parallel>], iteration_bounds = array<i64: 1>, scalar_prefetch = 0 : i64, scratch_operands = 0 : i64, tpu.core_type = #tpu.core_type<tc>, window_params = [{transform_indices = @transform_0, window_bounds = array<i64: 11, 128>}, {pipeline_mode = #tpu.pipeline_mode<synchronous>, transform_indices = @transform_1, window_bounds = array<i64: 32, 11>}, {pipeline_mode = #tpu.pipeline_mode<synchronous>, transform_indices = @transform_2, window_bounds = array<i64: 32, 1>}, {pipeline_mode = #tpu.pipeline_mode<synchronous>, transform_indices = @transform_3, window_bounds = array<i64: 32, 32>}, {pipeline_mode = #tpu.pipeline_mode<synchronous>, transform_indices = @transform_4, window_bounds = array<i64: 32, 1>}, {pipeline_mode = #tpu.pipeline_mode<synchronous>, transform_indices = @transform_5, window_bounds = array<i64: 1, 32>}, {pipeline_mode = #tpu.pipeline_mode<synchronous>, transform_indices = @transform_6, window_bounds = array<i64: 1, 1>}, {transform_indices = @transform_7, window_bounds = array<i64: 1, 128>}]} {
    %c0 = arith.constant 0 : index
    %c0_0 = arith.constant 0 : index
    %0 = vector.load %arg1[%c0, %c0_0] : memref<11x128xf32, #tpu.memory_space<vmem>>, vector<11x128xf32>
    %c0_1 = arith.constant 0 : index
    %c0_2 = arith.constant 0 : index
    %1 = vector.load %arg2[%c0_1, %c0_2] : memref<32x11xf32, #tpu.memory_space<vmem>>, vector<32x11xf32>
    %cst = arith.constant dense<0.000000e+00> : vector<32x128xf32>
    %2 = tpu.matmul %1, %0, %cst {dimension_numbers = #tpu.dot_dimension_numbers<[1], [0], [0], [1], [0, 0, 1, 1], [], []>} : vector<32x11xf32>, vector<11x128xf32>, vector<32x128xf32> -> vector<32x128xf32>
    %c0_3 = arith.constant 0 : index
    %c0_4 = arith.constant 0 : index
    %3 = vector.load %arg3[%c0_3, %c0_4] : memref<32x1xf32, #tpu.memory_space<vmem>>, vector<32x1xf32>
    %4 = vector.broadcast %3 : vector<32x1xf32> to vector<32x128xf32>
    %5 = arith.addf %2, %4 : vector<32x128xf32>
    %cst_5 = arith.constant 0.000000e+00 : f32
    %6 = vector.broadcast %cst_5 : f32 to vector<32x128xf32>
    %7 = arith.maximumf %5, %6 : vector<32x128xf32>
    %c0_6 = arith.constant 0 : index
    %c0_7 = arith.constant 0 : index
    %8 = vector.load %arg4[%c0_6, %c0_7] : memref<32x32xf32, #tpu.memory_space<vmem>>, vector<32x32xf32>
    %cst_8 = arith.constant dense<0.000000e+00> : vector<32x128xf32>
    %9 = tpu.matmul %8, %7, %cst_8 {dimension_numbers = #tpu.dot_dimension_numbers<[1], [0], [0], [1], [0, 0, 1, 1], [], []>} : vector<32x32xf32>, vector<32x128xf32>, vector<32x128xf32> -> vector<32x128xf32>
    %c0_9 = arith.constant 0 : index
    %c0_10 = arith.constant 0 : index
    %10 = vector.load %arg5[%c0_9, %c0_10] : memref<32x1xf32, #tpu.memory_space<vmem>>, vector<32x1xf32>
    %11 = vector.broadcast %10 : vector<32x1xf32> to vector<32x128xf32>
    %12 = arith.addf %9, %11 : vector<32x128xf32>
    %cst_11 = arith.constant 0.000000e+00 : f32
    %13 = vector.broadcast %cst_11 : f32 to vector<32x128xf32>
    %14 = arith.maximumf %12, %13 : vector<32x128xf32>
    %c0_12 = arith.constant 0 : index
    %c0_13 = arith.constant 0 : index
    %15 = vector.load %arg6[%c0_12, %c0_13] : memref<1x32xf32, #tpu.memory_space<vmem>>, vector<1x32xf32>
    %cst_14 = arith.constant dense<0.000000e+00> : vector<1x128xf32>
    %16 = tpu.matmul %15, %14, %cst_14 {dimension_numbers = #tpu.dot_dimension_numbers<[1], [0], [0], [1], [0, 0, 1, 1], [], []>} : vector<1x32xf32>, vector<32x128xf32>, vector<1x128xf32> -> vector<1x128xf32>
    %c0_15 = arith.constant 0 : index
    %c0_16 = arith.constant 0 : index
    %17 = vector.load %arg7[%c0_15, %c0_16] : memref<1x1xf32, #tpu.memory_space<vmem>>, vector<1x1xf32>
    %18 = vector.broadcast %17 : vector<1x1xf32> to vector<1x128xf32>
    %19 = arith.addf %16, %18 : vector<1x128xf32>
    %c0_17 = arith.constant 0 : index
    %c0_18 = arith.constant 0 : index
    %20 = vector.load %arg8[%c0_17, %c0_18] : memref<1x128xf32, #tpu.memory_space<vmem>>, vector<1x128xf32>
    tpu.vector_store %arg8[%c0_17, %c0_18], %19 {strides = array<i32>} : memref<1x128xf32, #tpu.memory_space<vmem>>, vector<1x128xf32>,
    return
  }
  func.func @transform_0(%arg0: i32) -> (i32, i32) {
    %c0_i32 = arith.constant 0 : i32
    %c0_i32_0 = arith.constant 0 : i32
    return %c0_i32, %arg0 : i32, i32
  }
  func.func @transform_1(%arg0: i32) -> (i32, i32) {
    %c0_i32 = arith.constant 0 : i32
    %c0_i32_0 = arith.constant 0 : i32
    %c0_i32_1 = arith.constant 0 : i32
    return %c0_i32, %c0_i32_0 : i32, i32
  }
  func.func @transform_2(%arg0: i32) -> (i32, i32) {
    %c0_i32 = arith.constant 0 : i32
    %c0_i32_0 = arith.constant 0 : i32
    %c0_i32_1 = arith.constant 0 : i32
    return %c0_i32, %c0_i32_0 : i32, i32
  }
  func.func @transform_3(%arg0: i32) -> (i32, i32) {
    %c0_i32 = arith.constant 0 : i32
    %c0_i32_0 = arith.constant 0 : i32
    %c0_i32_1 = arith.constant 0 : i32
    return %c0_i32, %c0_i32_0 : i32, i32
  }
  func.func @transform_4(%arg0: i32) -> (i32, i32) {
    %c0_i32 = arith.constant 0 : i32
    %c0_i32_0 = arith.constant 0 : i32
    %c0_i32_1 = arith.constant 0 : i32
    return %c0_i32, %c0_i32_0 : i32, i32
  }
  func.func @transform_5(%arg0: i32) -> (i32, i32) {
    %c0_i32 = arith.constant 0 : i32
    %c0_i32_0 = arith.constant 0 : i32
    %c0_i32_1 = arith.constant 0 : i32
    return %c0_i32, %c0_i32_0 : i32, i32
  }
  func.func @transform_6(%arg0: i32) -> (i32, i32) {
    %c0_i32 = arith.constant 0 : i32
    %c0_i32_0 = arith.constant 0 : i32
    %c0_i32_1 = arith.constant 0 : i32
    return %c0_i32, %c0_i32_0 : i32, i32
  }
  func.func @transform_7(%arg0: i32) -> (i32, i32) {
    %c0_i32 = arith.constant 0 : i32
    %c0_i32_0 = arith.constant 0 : i32
    return %c0_i32, %arg0 : i32, i32
  }
}

</mosaic_0001>

<bundles_post_ra>
// kernel: nn_forward.1
= control target key start
LH: loop header
LB: loop body
LE: loop exit
PB: predicated region body
PF: predicated region fallthrough
CT: control target
= control target key end

     0   :  { %vm71_vm0 = vcmask 1042432   ;;  %vm58_vm1 = vcmask 89088   ;;  %vm474_vm2 = vmmov 1   ;;  %v475_v2 = vmov 0   ;;  %s591_s0 = inlined_call_operand.vmem [shape: f32[11,128], index: 0, kind: input, shape index: {}]   ;;  %s592_s1 = inlined_call_operand.vmem [shape: f32[32,11], index: 1, kind: input, shape index: {}]   ;;  %s593_s2 = inlined_call_operand.vmem [shape: f32[32,1], index: 2, kind: input, shape index: {}]   ;;  %s594_s6 = inlined_call_operand.<no memory space> [shape: f32[1,1], index: 6, kind: input, shape index: {}]   ;;  %s595_s4 = inlined_call_operand.vmem [shape: f32[32,1], index: 4, kind: input, shape index: {}]   ;;  %s596_s3 = inlined_call_operand.vmem [shape: f32[32,32], index: 3, kind: input, shape index: {}]   ;;  %s597_s5 = inlined_call_operand.vmem [shape: f32[1,32], index: 5, kind: input, shape index: {}]   ;;  %s598_s7 = inlined_call_operand.vmem [shape: f32[1,128], index: 7, kind: output, shape index: {}]  }
   0x1   :  { %v28_v0 = vld [vmem:[%s591_s0] sm:$0xff]  ;;  %v29_v1 = vld [vmem:[%s591_s0 + $0x8] sm:$0x7]  ;;  %vm448_vm3 = vmpackc.low %vm71_vm0, %vm474_vm2  ;;  %472 = vset.pattern.permute.xlu0 %v475_v2  ;;  %473 = vset.pattern.permute.xlu1 %v475_v2  ;;  %v12_v3 = vstv %s594_s6  ;;  %vm192_vm4 = vcmask 261120   ;;  %v476_v40 = vmov 0.0|0.0   ;;  %vm477_vm5 = vmmov 0  }
   0x2   :  { %v447_v4 = vpack.c.bf16 %v29_v1, %v28_v0  ;;  %v30_v5 = vld [vmem:[%s592_s1] sm:$0xff]  ;;  %13 = vst [vmem:[#allocation2] sm:$0x1] %v12_v3  ;;  %v36_v7 = vld [vmem:[%s593_s2 + $0x10] sm:$0xff]  ;;  %v31_v8 = vld [vmem:[%s592_s1 + $0x8] sm:$0xff]  ;;  %v478_v41 = vmov 0.0   ;;  %v301_v61 = vlaneseq }
   0x3   :  { %416 = vmatprep.mubr.msk.f32.mxu0 %vm58_vm1, %v30_v5  ;;  %v34_v6 = vld [vmem:[%s593_s2] sm:$0xff]  ;;  %v35_v9 = vld [vmem:[%s593_s2 + $0x8] sm:$0xff]  ;;  %50 = vperm.xlu1 %473, %v36_v7   ;;  %v32_v10 = vld [vmem:[%s592_s1 + $0x10] sm:$0xff] }
   0x4   :  { %449 = vmatprep.subr.msk.bf16.mxu0 %vm448_vm3, %v447_v4  ;;  %40 = vperm.xlu0 %472, %v34_v6   ;;  %v37_v11 = vld [vmem:[%s593_s2 + $0x18] sm:$0xff]  ;;  %v168_v13 = vld [vmem:[%s595_s4] sm:$0xff]  ;;  %v169_v14 = vld [vmem:[%s595_s4 + $0x8] sm:$0xff]  ;;  %v302_v62 = vshrl.u32 %v301_v61, 7 }
   0x5   :  { %452 = vmatpush3.bf16.msk.msra.mxu0 %vm448_vm3, %v447_v4  ;;  %v33_v12 = vld [vmem:[%s592_s1 + $0x18] sm:$0xff]  ;;  %v170_v15 = vld [vmem:[%s595_s4 + $0x10] sm:$0xff]  ;;  %v164_v18 = vld [vmem:[%s596_s3] sm:$0xff] }
   0x6   :  { %v171_v16 = vld [vmem:[%s595_s4 + $0x18] sm:$0xff]  ;;  %430 = vmatprep.mubr.msk.f32.mxu1 %vm192_vm4, %v164_v18  ;;  %v165_v37 = vld [vmem:[%s596_s3 + $0x8] sm:$0xff]  ;;  %v166_v38 = vld [vmem:[%s596_s3 + $0x10] sm:$0xff]  ;;  %461 = vmatprep.subr.bf16.mxu0 %v476_v40  ;;  %v303_v63 = vsub.s32 0, %v302_v62 }
   0x7   :  { %55 = vperm.xlu1 %473, %v37_v11   ;;  %v167_v39 = vld [vmem:[%s596_s3 + $0x18] sm:$0xff]  ;;  %v294_v60 = vld [vmem:[%s597_s5] sm:$0x1] }
   0x8   :  { %417 = vmatmul.mubr.msk.f32.vlgmr.msra.gmra.mrb[0].mxu0 %vm58_vm1, %v31_v8  ;;  %45 = vperm.xlu0 %472, %v35_v9  }
   0x9   :  { %419 = vmatprep.mubr.msk.f32.mxu0 %vm58_vm1, %v32_v10  ;;  %v295_v17 = vld [vmem:[#allocation2] sm:$0x1] }
   0xb   :  { %179 = vperm.xlu1 %473, %v169_v14  }
   0xc   :  { %420 = vmatmul.mubr.msk.f32.gmra.mrb[2].mxu0 %vm58_vm1, %v33_v12  ;;  %174 = vperm.xlu0 %472, %v168_v13  }
   0xd   :  { %444 = vmatprep.mubr.msk.f32.mxu0 %vm477_vm5, %v478_v41 }
   0xf   :  { %189 = vperm.xlu1 %473, %v171_v16  }
  0x10   :  { %184 = vperm.xlu0 %472, %v170_v15  }
  0x14   :  { %298 = vperm.xlu0 %472, %v295_v17  }
  0x82   :  { %v51_v20 = vpop.permute.xlu1 %50 }
  0x83   :  { %v41_v19 = vpop.permute.xlu0 %40 }
  0x86   :  { %v56_v27 = vpop.permute.xlu1 %55 }
  0x87   :  { %v46_v21 = vpop.permute.xlu0 %45 }
  0x8a   :  { %v180_v42 = vpop.permute.xlu1 %179 }
  0x8b   :  { %v175_v43 = vpop.permute.xlu0 %174 }
  0x8e   :  { %v190_v49 = vpop.permute.xlu1 %189 }
  0x8f   :  { %v185_v52 = vpop.permute.xlu0 %184 }
  0x93   :  { %v299_v0 = vpop.permute.xlu0 %298 }
  0x94   :  { %v304_v1 = vrot.slane %v299_v0, %v303_v63 }
  0xdb   :  { %v418_v22 = vpop.f32.mrb[0].mxu0 }
  0xdc   :  { %v147_v23 = vadd.f32 %v418_v22, %v46_v21  ;;  %v141_v24 = vpop.f32.mrb[1].mxu0 }
  0xdd   :  { %v142_v25 = vadd.f32 %v141_v24, %v41_v19 }
  0xde   :  { %v161_v26 = vmax.f32 %v147_v23, 0.0 }
  0xdf   :  { %v160_v28 = vmax.f32 %v142_v25, 0.0  ;;  %v421_v29 = vpop.f32.mrb[2].mxu0 }
  0xe0   :  { %v157_v30 = vadd.f32 %v421_v29, %v56_v27  ;;  %v151_v31 = vpop.f32.mrb[3].mxu0 }
  0xe1   :  { %v152_v32 = vadd.f32 %v151_v31, %v51_v20  ;;  %v453_v33 = vpack.c.bf16 %v161_v26, %v160_v28 }
  0xe2   :  { %v163_v34 = vmax.f32 %v157_v30, 0.0 }
  0xe3   :  { %v162_v35 = vmax.f32 %v152_v32, 0.0  ;;  %454 = vmatprep.subr.bf16.mxu1 %v453_v33 }
  0xe4   :  { %456 = vmatpush3.bf16.msra.mxu1 %v453_v33 }
  0xe5   :  { %v457_v36 = vpack.c.bf16 %v163_v34, %v162_v35 }
  0xe7   :  { %458 = vmatprep.subr.bf16.mxu1 %v457_v36 }
  0xe8   :  { %460 = vmatpush3.bf16.msra.mxu1 %v457_v36 }
  0xeb   :  { %431 = vmatmul.mubr.msk.f32.vlgmr.msra.gmra.mrb[0].mxu1 %vm192_vm4, %v165_v37 }
  0xec   :  { %433 = vmatprep.mubr.msk.f32.mxu1 %vm192_vm4, %v166_v38 }
  0xef   :  { %434 = vmatmul.mubr.msk.f32.gmra.mrb[2].mxu1 %vm192_vm4, %v167_v39 }
 0x1be   :  { %v432_v44 = vpop.f32.mrb[0].mxu1 }
 0x1bf   :  { %v277_v45 = vadd.f32 %v432_v44, %v180_v42  ;;  %v271_v46 = vpop.f32.mrb[1].mxu1 }
 0x1c0   :  { %v272_v47 = vadd.f32 %v271_v46, %v175_v43 }
 0x1c1   :  { %v291_v48 = vmax.f32 %v277_v45, 0.0 }
 0x1c2   :  { %v290_v50 = vmax.f32 %v272_v47, 0.0  ;;  %v435_v51 = vpop.f32.mrb[2].mxu1 }
 0x1c3   :  { %v287_v53 = vadd.f32 %v435_v51, %v190_v49  ;;  %v281_v54 = vpop.f32.mrb[3].mxu1 }
 0x1c4   :  { %v462_v55 = vpack.c.bf16 %v291_v48, %v290_v50  ;;  %v282_v56 = vadd.f32 %v281_v54, %v185_v52 }
 0x1c5   :  { %v293_v57 = vmax.f32 %v287_v53, 0.0 }
 0x1c6   :  { %v292_v58 = vmax.f32 %v282_v56, 0.0  ;;  %463 = vmatpush3.bf16.msra.mxu0 %v462_v55 }
 0x1c7   :  { %464 = vmatprep.subr.bf16.mxu0 %v476_v40 }
 0x1c8   :  { %v465_v59 = vpack.c.bf16 %v293_v57, %v292_v58 }
 0x1ca   :  { %466 = vmatpush3.bf16.msra.mxu0 %v465_v59 }
 0x1cd   :  { %445 = vmatmul.mubr.msk.f32.vlgmr.msra.gmra.mrb[4].mxu0 %vm192_vm4, %v294_v60 }
 0x2a0   :  { %v374_v2 = vpop.f32.mrb[4].mxu0 }
 0x2a1   :  { %v375_v3 = vadd.f32 %v374_v2, %v304_v1  ;;  %v446_v4 = vpop.f32.mrb[5].mxu0 }
 0x2a3   :  { %378 = vst [vmem:[%s598_s7] sm:$0x1] %v375_v3 }

</bundles_post_ra>
